<compile_context>
chip_gen: v6e
topology: v6e:2x2x1
jax: 0.10.0
libtpu: 0.0.40
codegen_flags: <defaults>
</compile_context>

<pallas_src>
import functools

import jax
import jax.numpy as jnp
import numpy as np
from jax import lax
from jax.experimental import pallas as pl
from jax.experimental.pallas import tpu as pltpu

LANE = 128


def _make_fold(tr, ar):
    """Fold a (tr, 128) tile to an (ar, 128) slab with VPU adds only."""
    if tr == ar:
        return lambda x: x

    def fold(x):
        return jnp.sum(x.reshape(tr // ar, ar, x.shape[-1]), axis=0)

    return fold


def _tile_stats(logs, yoh, valid, fold):
    """Per-tile statistics.

    logs  : list of C arrays (tr, 128) f32 — logits per channel
    yoh   : list of C arrays (tr, 128) f32 — (soft) one-hot targets per channel
    valid : (tr, 128) f32 mask for padded pixels, or None
    fold  : (tr,128) -> (ar,128) partial reducer

    Returns list of K = 1 + 3*(C-1) folded (ar,128) partial sums:
      [ce, tp_1..tp_{C-1}, sum_pred_1.., sum_yoh_1..]
    """
    C = len(logs)

    # channel max / sum: elementwise VPU ops across C full slabs.
    m = logs[0]
    for c in range(1, C):
        m = jnp.maximum(m, logs[c])
    z = [x - m for x in logs]
    e = [jnp.exp(zc) for zc in z]          # single exp pass, reused below
    sumexp = e[0]
    for c in range(1, C):
        sumexp = sumexp + e[c]
    log_sumexp = jnp.log(sumexp)
    inv_sumexp = 1.0 / sumexp

    # cross-entropy numerator: sum_c yoh_c * (log_sumexp - z_c)
    # (padded pixels have yoh == 0, so no mask needed here)
    ce = yoh[0] * (log_sumexp - z[0])
    for c in range(1, C):
        ce = ce + yoh[c] * (log_sumexp - z[c])
    parts = [fold(ce)]

    preds = [e[c] * inv_sumexp for c in range(1, C)]   # softmax, reuses exp(z)

    # tp_c = sum(yoh_c * pred_c)      (background channel 0 dropped)
    for c in range(1, C):
        parts.append(fold(yoh[c] * preds[c - 1]))
    # sum(pred_c)  — needs masking of padded pixels
    for c in range(1, C):
        p = preds[c - 1] if valid is None else preds[c - 1] * valid
        parts.append(fold(p))
    # sum(yoh_c)   — padded targets are zero already
    for c in range(1, C):
        parts.append(fold(yoh[c]))
    return parts


def _build_label_kernel(C, tr, ar, masked):
    fold = _make_fold(tr, ar)

    def kernel(lab_ref, logs_ref, out_ref):
        i = pl.program_id(2)

        @pl.when(i == 0)
        def _init():
            out_ref[...] = jnp.zeros_like(out_ref)

        lab = lab_ref[0, 0]                                        # (tr,128) i32
        logs = [logs_ref[0, c].astype(jnp.float32) for c in range(C)]
        yoh = [(lab == c).astype(jnp.float32) for c in range(C)]   # in-kernel 1-hot
        valid = (lab >= 0).astype(jnp.float32) if masked else None # pad label = -1

        parts = _tile_stats(logs, yoh, valid, fold)
        for k, p in enumerate(parts):
            out_ref[0, 0, k] += p

    return kernel


def _build_onehot_kernel(C, tr, ar, masked, n_inner, S):
    fold = _make_fold(tr, ar)

    def kernel(yoh_ref, logs_ref, out_ref):
        o = pl.program_id(1)
        i = pl.program_id(2)

        @pl.when(i == 0)
        def _init():
            out_ref[...] = jnp.zeros_like(out_ref)

        logs = [logs_ref[0, c].astype(jnp.float32) for c in range(C)]
        yoh = [yoh_ref[0, c].astype(jnp.float32) for c in range(C)]

        if masked:
            base = (o * n_inner + i) * tr
            rows = lax.broadcasted_iota(jnp.int32, (tr, LANE), 0) + base
            lanes = lax.broadcasted_iota(jnp.int32, (tr, LANE), 1)
            valid = ((rows * LANE + lanes) < S).astype(jnp.float32)
        else:
            valid = None

        parts = _tile_stats(logs, yoh, valid, fold)
        for k, p in enumerate(parts):
            out_ref[0, 0, k] += p

    return kernel


@functools.partial(jax.jit,
                   static_argnames=("eps", "ce_weight", "dice_weight", "tile_rows"))
def ce_dice_loss(logs, yb, eps=1e-5, ce_weight=1.0, dice_weight=1.0, tile_rows=64):
    """CE_dice_loss.forward(logs, yb, mask=None).

    logs : (N, C, *spatial) float logits (any dtype; upcast in-kernel)
    yb   : (N, 1, *spatial) integer labels, or (N, C, *spatial) one-hot / soft
    """
    N, C = int(logs.shape[0]), int(logs.shape[1])
    spatial = logs.shape[2:]
    S = int(np.prod(spatial))
    label_mode = int(yb.shape[1]) == 1

    # ---- tiling: (rows, 128) spatial layout ------------------------------
    R = -(-S // LANE)
    # cap per-block logit bytes (~2 MiB) so large-C problems fit VMEM on v7x
    max_rows = max(8, ((2 * 1024 * 1024) // (C * LANE * 4)) // 8 * 8)
    tr_target = max(8, (min(int(tile_rows), max_rows) // 8) * 8)
    if R <= tr_target:
        tr, T = R, 1
    else:
        tr = tr_target
        T = -(-R // tr)
    R_pad = T * tr
    S_pad = R_pad * LANE
    masked = S_pad != S
    n_outer = 2 if (T >= 2 and T % 2 == 0) else 1   # 2nd parallel axis (v7x)
    n_inner = T // n_outer
    ar = 8 if tr % 8 == 0 else tr
    K = 1 + 3 * (C - 1)

    # ---- inputs (native dtype logits; raw int labels) --------------------
    logs3 = logs.reshape(N, C, S)
    if masked:
        logs3 = jnp.pad(logs3, ((0, 0), (0, 0), (0, S_pad - S)))
    logs4 = logs3.reshape(N, C, R_pad, LANE)

    if label_mode:
        lab3 = yb.reshape(N, 1, S).astype(jnp.int32)
        if masked:
            lab3 = jnp.pad(lab3, ((0, 0), (0, 0), (0, S_pad - S)),
                           constant_values=-1)
        tgt4 = lab3.reshape(N, 1, R_pad, LANE)
        tgt_block = (1, 1, tr, LANE)
        kernel = _build_label_kernel(C, tr, ar, masked)
    else:
        yoh3 = yb.reshape(N, C, S)
        if masked:
            yoh3 = jnp.pad(yoh3, ((0, 0), (0, 0), (0, S_pad - S)))
        tgt4 = yoh3.reshape(N, C, R_pad, LANE)
        tgt_block = (1, C, tr, LANE)
        kernel = _build_onehot_kernel(C, tr, ar, masked, n_inner, S)

    partial = pl.pallas_call(
        kernel,
        out_shape=jax.ShapeDtypeStruct((N, n_outer, K, ar, LANE), jnp.float32),
        grid_spec=pltpu.PrefetchScalarGridSpec(
            num_scalar_prefetch=0,
            grid=(N, n_outer, n_inner),
            in_specs=[
                pl.BlockSpec(tgt_block,
                             lambda n, o, i: (n, 0, o * n_inner + i, 0)),
                pl.BlockSpec((1, C, tr, LANE),
                             lambda n, o, i: (n, 0, o * n_inner + i, 0)),
            ],
            out_specs=pl.BlockSpec((1, 1, K, ar, LANE),
                                   lambda n, o, i: (n, o, 0, 0, 0)),
        ),
        compiler_params=pltpu.CompilerParams(
            dimension_semantics=("parallel", "parallel", "arbitrary")),
    )(tgt4, logs4)

    # ---- tiny finalization (O(N*K)) --------------------------------------
    stats = jnp.sum(partial, axis=(1, 3, 4))                      # (N, K)
    ce = jnp.sum(stats[:, 0]) / jnp.float32(N * S)                # mean over N,H,W
    tp = stats[:, 1:C]                                            # classes 1..C-1
    sp = stats[:, C:2 * C - 1]                                    # sum(pred)
    sy = stats[:, 2 * C - 1:3 * C - 2]                            # sum(target)
    # 2tp + fp + fn == sum(pred) + sum(target)
    dice = (2.0 * tp + eps) / (sp + sy + eps)
    dice_l = -jnp.mean(dice)
    return ce_weight * ce + dice_weight * dice_l


def _reference_loss(logs, yb, eps=1e-5, ce_weight=1.0, dice_weight=1.0):
    """Pure-JAX reference mirroring the PyTorch module (for verification)."""
    C = logs.shape[1]
    if yb.shape[1] == 1:
        ch = jnp.arange(C).reshape((1, C) + (1,) * (logs.ndim - 2))
        yb = (yb.astype(jnp.int32) == ch).astype(jnp.float32)
    logsm = jax.nn.log_softmax(logs.astype(jnp.float32), axis=1)
    ce = -jnp.mean(jnp.sum(yb * logsm, axis=1))
    pred = jax.nn.softmax(logs.astype(jnp.float32), axis=1)[:, 1:]
    tgt = yb[:, 1:]
    dims = tuple(range(2, logs.ndim))
    tp = jnp.sum(tgt * pred, axis=dims)
    fn = jnp.sum(tgt * (1.0 - pred), axis=dims)
    fp = jnp.sum((1.0 - tgt) * pred, axis=dims)
    dice = (2 * tp + eps) / (2 * tp + fp + fn + eps)
    return ce_weight * ce + dice_weight * (-jnp.mean(dice))


if __name__ == "__main__":
    key = jax.random.PRNGKey(0)
    k1, k2, k3, k4 = jax.random.split(key, 4)

    ok = True

    # Case 1: integer-label targets (hot path), 16x16.
    N, C, H, W = 2, 4, 16, 16
    logs = jax.random.normal(k1, (N, C, H, W), dtype=jnp.float32)
    yb = jax.random.randint(k2, (N, 1, H, W), 0, C, dtype=jnp.int32)
    loss = ce_dice_loss(logs, yb)
    jax.block_until_ready(loss)
    ref = _reference_loss(logs, yb)
    ok &= bool(jnp.allclose(loss, ref, atol=1e-4, rtol=1e-4))

    # Case 2: pre-one-hot targets.
    ch = jnp.arange(C, dtype=jnp.int32).reshape(1, C, 1, 1)
    yb_oh = (yb == ch).astype(jnp.float32)
    loss2 = ce_dice_loss(logs, yb_oh)
    jax.block_until_ready(loss2)
    ref2 = _reference_loss(logs, yb_oh)
    ok &= bool(jnp.allclose(loss2, ref2, atol=1e-4, rtol=1e-4))

    # Case 3: spatial size not divisible by 128 (exercises padding + mask).
    H2, W2 = 15, 15
    logs3 = jax.random.normal(k3, (N, C, H2, W2), dtype=jnp.float32)
    yb3 = jax.random.randint(k4, (N, 1, H2, W2), 0, C, dtype=jnp.int32)
    loss3 = ce_dice_loss(logs3, yb3)
    jax.block_until_ready(loss3)
    ref3 = _reference_loss(logs3, yb3)
    ok &= bool(jnp.allclose(loss3, ref3, atol=1e-4, rtol=1e-4))

    assert ok, (loss, ref, loss2, ref2, loss3, ref3)
    print("KERNEL_OK")
</pallas_src>

<mosaic_0001>
module attributes {stable_mosaic.version = 11 : i64} {
  func.func @kernel(%arg0: i32, %arg1: i32, %arg2: i32, %arg3: memref<1x1x2x128xi32, #tpu.memory_space<vmem>>, %arg4: memref<1x4x2x128xf32, #tpu.memory_space<vmem>>, %arg5: memref<1x1x10x2x128xf32, #tpu.memory_space<vmem>>) attributes {dimension_semantics = [#tpu.dimension_semantics<parallel>, #tpu.dimension_semantics<parallel>, #tpu.dimension_semantics<arbitrary>], iteration_bounds = array<i64: 2, 1, 1>, scalar_prefetch = 0 : i64, scratch_operands = 0 : i64, tpu.core_type = #tpu.core_type<tc>, window_params = [{transform_indices = @transform_0, window_bounds = array<i64: 1, 1, 2, 128>}, {transform_indices = @transform_1, window_bounds = array<i64: 1, 4, 2, 128>}, {transform_indices = @transform_2, window_bounds = array<i64: 1, 1, 10, 2, 128>}]} {
    %c0_i32 = arith.constant 0 : i32
    %0 = arith.cmpi eq, %arg2, %c0_i32 : i32
    %1 = arith.extui %0 : i1 to i32
    %c0_i32_0 = arith.constant 0 : i32
    %2 = arith.cmpi ne, %1, %c0_i32_0 : i32
    scf.if %2 {
      %cst_112 = arith.constant 0.000000e+00 : f32
      %123 = vector.broadcast %cst_112 : f32 to vector<1x1x10x2x128xf32>
      %c0_113 = arith.constant 0 : index
      %c0_114 = arith.constant 0 : index
      %c0_115 = arith.constant 0 : index
      %c0_116 = arith.constant 0 : index
      %c0_117 = arith.constant 0 : index
      %124 = vector.load %arg5[%c0_113, %c0_114, %c0_115, %c0_116, %c0_117] : memref<1x1x10x2x128xf32, #tpu.memory_space<vmem>>, vector<1x1x10x2x128xf32>
      tpu.vector_store %arg5[%c0_113, %c0_114, %c0_115, %c0_116, %c0_117], %123 {strides = array<i32>} : memref<1x1x10x2x128xf32, #tpu.memory_space<vmem>>, vector<1x1x10x2x128xf32>,
    } else {
    }
    %c0 = arith.constant 0 : index
    %c0_1 = arith.constant 0 : index
    %c0_2 = arith.constant 0 : index
    %c0_3 = arith.constant 0 : index
    %3 = vector.load %arg3[%c0, %c0_1, %c0_2, %c0_3] : memref<1x1x2x128xi32, #tpu.memory_space<vmem>>, vector<1x1x2x128xi32>
    %4 = vector.shape_cast %3 : vector<1x1x2x128xi32> to vector<2x128xi32>
    %c0_4 = arith.constant 0 : index
    %c0_5 = arith.constant 0 : index
    %c0_6 = arith.constant 0 : index
    %c0_7 = arith.constant 0 : index
    %5 = vector.load %arg4[%c0_4, %c0_5, %c0_6, %c0_7] : memref<1x4x2x128xf32, #tpu.memory_space<vmem>>, vector<1x1x2x128xf32>
    %6 = vector.shape_cast %5 : vector<1x1x2x128xf32> to vector<2x128xf32>
    %c0_8 = arith.constant 0 : index
    %c1 = arith.constant 1 : index
    %c0_9 = arith.constant 0 : index
    %c0_10 = arith.constant 0 : index
    %7 = vector.load %arg4[%c0_8, %c1, %c0_9, %c0_10] : memref<1x4x2x128xf32, #tpu.memory_space<vmem>>, vector<1x1x2x128xf32>
    %8 = vector.shape_cast %7 : vector<1x1x2x128xf32> to vector<2x128xf32>
    %c0_11 = arith.constant 0 : index
    %c2 = arith.constant 2 : index
    %c0_12 = arith.constant 0 : index
    %c0_13 = arith.constant 0 : index
    %9 = vector.load %arg4[%c0_11, %c2, %c0_12, %c0_13] : memref<1x4x2x128xf32, #tpu.memory_space<vmem>>, vector<1x1x2x128xf32>
    %10 = vector.shape_cast %9 : vector<1x1x2x128xf32> to vector<2x128xf32>
    %c0_14 = arith.constant 0 : index
    %c3 = arith.constant 3 : index
    %c0_15 = arith.constant 0 : index
    %c0_16 = arith.constant 0 : index
    %11 = vector.load %arg4[%c0_14, %c3, %c0_15, %c0_16] : memref<1x4x2x128xf32, #tpu.memory_space<vmem>>, vector<1x1x2x128xf32>
    %12 = vector.shape_cast %11 : vector<1x1x2x128xf32> to vector<2x128xf32>
    %c0_i32_17 = arith.constant 0 : i32
    %13 = vector.broadcast %c0_i32_17 : i32 to vector<2x128xi32>
    %14 = arith.cmpi eq, %4, %13 : vector<2x128xi32>
    %15 = arith.extui %14 : vector<2x128xi1> to vector<2x128xi32>
    %16 = arith.sitofp %15 : vector<2x128xi32> to vector<2x128xf32>
    %c1_i32 = arith.constant 1 : i32
    %17 = vector.broadcast %c1_i32 : i32 to vector<2x128xi32>
    %18 = arith.cmpi eq, %4, %17 : vector<2x128xi32>
    %19 = arith.extui %18 : vector<2x128xi1> to vector<2x128xi32>
    %20 = arith.sitofp %19 : vector<2x128xi32> to vector<2x128xf32>
    %c2_i32 = arith.constant 2 : i32
    %21 = vector.broadcast %c2_i32 : i32 to vector<2x128xi32>
    %22 = arith.cmpi eq, %4, %21 : vector<2x128xi32>
    %23 = arith.extui %22 : vector<2x128xi1> to vector<2x128xi32>
    %24 = arith.sitofp %23 : vector<2x128xi32> to vector<2x128xf32>
    %c3_i32 = arith.constant 3 : i32
    %25 = vector.broadcast %c3_i32 : i32 to vector<2x128xi32>
    %26 = arith.cmpi eq, %4, %25 : vector<2x128xi32>
    %27 = arith.extui %26 : vector<2x128xi1> to vector<2x128xi32>
    %28 = arith.sitofp %27 : vector<2x128xi32> to vector<2x128xf32>
    %29 = arith.maximumf %6, %8 : vector<2x128xf32>
    %30 = arith.maximumf %29, %10 : vector<2x128xf32>
    %31 = arith.maximumf %30, %12 : vector<2x128xf32>
    %32 = arith.subf %6, %31 : vector<2x128xf32>
    %33 = arith.subf %8, %31 : vector<2x128xf32>
    %34 = arith.subf %10, %31 : vector<2x128xf32>
    %35 = arith.subf %12, %31 : vector<2x128xf32>
    %36 = math.exp %32 : vector<2x128xf32>
    %37 = math.exp %33 : vector<2x128xf32>
    %38 = math.exp %34 : vector<2x128xf32>
    %39 = math.exp %35 : vector<2x128xf32>
    %40 = arith.addf %36, %37 : vector<2x128xf32>
    %41 = arith.addf %40, %38 : vector<2x128xf32>
    %42 = arith.addf %41, %39 : vector<2x128xf32>
    %43 = math.log %42 : vector<2x128xf32>
    %cst = arith.constant 1.000000e+00 : f32
    %44 = vector.broadcast %cst : f32 to vector<2x128xf32>
    %45 = arith.divf %44, %42 : vector<2x128xf32>
    %46 = arith.subf %43, %32 : vector<2x128xf32>
    %47 = arith.mulf %16, %46 : vector<2x128xf32>
    %48 = arith.subf %43, %33 : vector<2x128xf32>
    %49 = arith.mulf %20, %48 : vector<2x128xf32>
    %50 = arith.addf %47, %49 : vector<2x128xf32>
    %51 = arith.subf %43, %34 : vector<2x128xf32>
    %52 = arith.mulf %24, %51 : vector<2x128xf32>
    %53 = arith.addf %50, %52 : vector<2x128xf32>
    %54 = arith.subf %43, %35 : vector<2x128xf32>
    %55 = arith.mulf %28, %54 : vector<2x128xf32>
    %56 = arith.addf %53, %55 : vector<2x128xf32>
    %57 = arith.mulf %37, %45 : vector<2x128xf32>
    %58 = arith.mulf %38, %45 : vector<2x128xf32>
    %59 = arith.mulf %39, %45 : vector<2x128xf32>
    %60 = arith.mulf %20, %57 : vector<2x128xf32>
    %61 = arith.mulf %24, %58 : vector<2x128xf32>
    %62 = arith.mulf %28, %59 : vector<2x128xf32>
    %c0_18 = arith.constant 0 : index
    %c0_19 = arith.constant 0 : index
    %c0_20 = arith.constant 0 : index
    %c0_21 = arith.constant 0 : index
    %c0_22 = arith.constant 0 : index
    %63 = vector.load %arg5[%c0_18, %c0_19, %c0_20, %c0_21, %c0_22] : memref<1x1x10x2x128xf32, #tpu.memory_space<vmem>>, vector<1x1x1x2x128xf32>
    %64 = vector.shape_cast %63 : vector<1x1x1x2x128xf32> to vector<2x128xf32>
    %65 = arith.addf %64, %56 : vector<2x128xf32>
    %c0_23 = arith.constant 0 : index
    %c0_24 = arith.constant 0 : index
    %c0_25 = arith.constant 0 : index
    %c0_26 = arith.constant 0 : index
    %c0_27 = arith.constant 0 : index
    %66 = vector.load %arg5[%c0_23, %c0_24, %c0_25, %c0_26, %c0_27] : memref<1x1x10x2x128xf32, #tpu.memory_space<vmem>>, vector<1x1x1x2x128xf32>
    %67 = vector.shape_cast %66 : vector<1x1x1x2x128xf32> to vector<2x128xf32>
    %68 = vector.shape_cast %65 : vector<2x128xf32> to vector<1x1x1x2x128xf32>
    tpu.vector_store %arg5[%c0_23, %c0_24, %c0_25, %c0_26, %c0_27], %68 {strides = array<i32>} : memref<1x1x10x2x128xf32, #tpu.memory_space<vmem>>, vector<1x1x1x2x128xf32>,
    %c0_28 = arith.constant 0 : index
    %c0_29 = arith.constant 0 : index
    %c1_30 = arith.constant 1 : index
    %c0_31 = arith.constant 0 : index
    %c0_32 = arith.constant 0 : index
    %69 = vector.load %arg5[%c0_28, %c0_29, %c1_30, %c0_31, %c0_32] : memref<1x1x10x2x128xf32, #tpu.memory_space<vmem>>, vector<1x1x1x2x128xf32>
    %70 = vector.shape_cast %69 : vector<1x1x1x2x128xf32> to vector<2x128xf32>
    %71 = arith.addf %70, %60 : vector<2x128xf32>
    %c0_33 = arith.constant 0 : index
    %c0_34 = arith.constant 0 : index
    %c1_35 = arith.constant 1 : index
    %c0_36 = arith.constant 0 : index
    %c0_37 = arith.constant 0 : index
    %72 = vector.load %arg5[%c0_33, %c0_34, %c1_35, %c0_36, %c0_37] : memref<1x1x10x2x128xf32, #tpu.memory_space<vmem>>, vector<1x1x1x2x128xf32>
    %73 = vector.shape_cast %72 : vector<1x1x1x2x128xf32> to vector<2x128xf32>
    %74 = vector.shape_cast %71 : vector<2x128xf32> to vector<1x1x1x2x128xf32>
    tpu.vector_store %arg5[%c0_33, %c0_34, %c1_35, %c0_36, %c0_37], %74 {strides = array<i32>} : memref<1x1x10x2x128xf32, #tpu.memory_space<vmem>>, vector<1x1x1x2x128xf32>,
    %c0_38 = arith.constant 0 : index
    %c0_39 = arith.constant 0 : index
    %c2_40 = arith.constant 2 : index
    %c0_41 = arith.constant 0 : index
    %c0_42 = arith.constant 0 : index
    %75 = vector.load %arg5[%c0_38, %c0_39, %c2_40, %c0_41, %c0_42] : memref<1x1x10x2x128xf32, #tpu.memory_space<vmem>>, vector<1x1x1x2x128xf32>
    %76 = vector.shape_cast %75 : vector<1x1x1x2x128xf32> to vector<2x128xf32>
    %77 = arith.addf %76, %61 : vector<2x128xf32>
    %c0_43 = arith.constant 0 : index
    %c0_44 = arith.constant 0 : index
    %c2_45 = arith.constant 2 : index
    %c0_46 = arith.constant 0 : index
    %c0_47 = arith.constant 0 : index
    %78 = vector.load %arg5[%c0_43, %c0_44, %c2_45, %c0_46, %c0_47] : memref<1x1x10x2x128xf32, #tpu.memory_space<vmem>>, vector<1x1x1x2x128xf32>
    %79 = vector.shape_cast %78 : vector<1x1x1x2x128xf32> to vector<2x128xf32>
    %80 = vector.shape_cast %77 : vector<2x128xf32> to vector<1x1x1x2x128xf32>
    tpu.vector_store %arg5[%c0_43, %c0_44, %c2_45, %c0_46, %c0_47], %80 {strides = array<i32>} : memref<1x1x10x2x128xf32, #tpu.memory_space<vmem>>, vector<1x1x1x2x128xf32>,
    %c0_48 = arith.constant 0 : index
    %c0_49 = arith.constant 0 : index
    %c3_50 = arith.constant 3 : index
    %c0_51 = arith.constant 0 : index
    %c0_52 = arith.constant 0 : index
    %81 = vector.load %arg5[%c0_48, %c0_49, %c3_50, %c0_51, %c0_52] : memref<1x1x10x2x128xf32, #tpu.memory_space<vmem>>, vector<1x1x1x2x128xf32>
    %82 = vector.shape_cast %81 : vector<1x1x1x2x128xf32> to vector<2x128xf32>
    %83 = arith.addf %82, %62 : vector<2x128xf32>
    %c0_53 = arith.constant 0 : index
    %c0_54 = arith.constant 0 : index
    %c3_55 = arith.constant 3 : index
    %c0_56 = arith.constant 0 : index
    %c0_57 = arith.constant 0 : index
    %84 = vector.load %arg5[%c0_53, %c0_54, %c3_55, %c0_56, %c0_57] : memref<1x1x10x2x128xf32, #tpu.memory_space<vmem>>, vector<1x1x1x2x128xf32>
    %85 = vector.shape_cast %84 : vector<1x1x1x2x128xf32> to vector<2x128xf32>
    %86 = vector.shape_cast %83 : vector<2x128xf32> to vector<1x1x1x2x128xf32>
    tpu.vector_store %arg5[%c0_53, %c0_54, %c3_55, %c0_56, %c0_57], %86 {strides = array<i32>} : memref<1x1x10x2x128xf32, #tpu.memory_space<vmem>>, vector<1x1x1x2x128xf32>,
    %c0_58 = arith.constant 0 : index
    %c0_59 = arith.constant 0 : index
    %c4 = arith.constant 4 : index
    %c0_60 = arith.constant 0 : index
    %c0_61 = arith.constant 0 : index
    %87 = vector.load %arg5[%c0_58, %c0_59, %c4, %c0_60, %c0_61] : memref<1x1x10x2x128xf32, #tpu.memory_space<vmem>>, vector<1x1x1x2x128xf32>
    %88 = vector.shape_cast %87 : vector<1x1x1x2x128xf32> to vector<2x128xf32>
    %89 = arith.addf %88, %57 : vector<2x128xf32>
    %c0_62 = arith.constant 0 : index
    %c0_63 = arith.constant 0 : index
    %c4_64 = arith.constant 4 : index
    %c0_65 = arith.constant 0 : index
    %c0_66 = arith.constant 0 : index
    %90 = vector.load %arg5[%c0_62, %c0_63, %c4_64, %c0_65, %c0_66] : memref<1x1x10x2x128xf32, #tpu.memory_space<vmem>>, vector<1x1x1x2x128xf32>
    %91 = vector.shape_cast %90 : vector<1x1x1x2x128xf32> to vector<2x128xf32>
    %92 = vector.shape_cast %89 : vector<2x128xf32> to vector<1x1x1x2x128xf32>
    tpu.vector_store %arg5[%c0_62, %c0_63, %c4_64, %c0_65, %c0_66], %92 {strides = array<i32>} : memref<1x1x10x2x128xf32, #tpu.memory_space<vmem>>, vector<1x1x1x2x128xf32>,
    %c0_67 = arith.constant 0 : index
    %c0_68 = arith.constant 0 : index
    %c5 = arith.constant 5 : index
    %c0_69 = arith.constant 0 : index
    %c0_70 = arith.constant 0 : index
    %93 = vector.load %arg5[%c0_67, %c0_68, %c5, %c0_69, %c0_70] : memref<1x1x10x2x128xf32, #tpu.memory_space<vmem>>, vector<1x1x1x2x128xf32>
    %94 = vector.shape_cast %93 : vector<1x1x1x2x128xf32> to vector<2x128xf32>
    %95 = arith.addf %94, %58 : vector<2x128xf32>
    %c0_71 = arith.constant 0 : index
    %c0_72 = arith.constant 0 : index
    %c5_73 = arith.constant 5 : index
    %c0_74 = arith.constant 0 : index
    %c0_75 = arith.constant 0 : index
    %96 = vector.load %arg5[%c0_71, %c0_72, %c5_73, %c0_74, %c0_75] : memref<1x1x10x2x128xf32, #tpu.memory_space<vmem>>, vector<1x1x1x2x128xf32>
    %97 = vector.shape_cast %96 : vector<1x1x1x2x128xf32> to vector<2x128xf32>
    %98 = vector.shape_cast %95 : vector<2x128xf32> to vector<1x1x1x2x128xf32>
    tpu.vector_store %arg5[%c0_71, %c0_72, %c5_73, %c0_74, %c0_75], %98 {strides = array<i32>} : memref<1x1x10x2x128xf32, #tpu.memory_space<vmem>>, vector<1x1x1x2x128xf32>,
    %c0_76 = arith.constant 0 : index
    %c0_77 = arith.constant 0 : index
    %c6 = arith.constant 6 : index
    %c0_78 = arith.constant 0 : index
    %c0_79 = arith.constant 0 : index
    %99 = vector.load %arg5[%c0_76, %c0_77, %c6, %c0_78, %c0_79] : memref<1x1x10x2x128xf32, #tpu.memory_space<vmem>>, vector<1x1x1x2x128xf32>
    %100 = vector.shape_cast %99 : vector<1x1x1x2x128xf32> to vector<2x128xf32>
    %101 = arith.addf %100, %59 : vector<2x128xf32>
    %c0_80 = arith.constant 0 : index
    %c0_81 = arith.constant 0 : index
    %c6_82 = arith.constant 6 : index
    %c0_83 = arith.constant 0 : index
    %c0_84 = arith.constant 0 : index
    %102 = vector.load %arg5[%c0_80, %c0_81, %c6_82, %c0_83, %c0_84] : memref<1x1x10x2x128xf32, #tpu.memory_space<vmem>>, vector<1x1x1x2x128xf32>
    %103 = vector.shape_cast %102 : vector<1x1x1x2x128xf32> to vector<2x128xf32>
    %104 = vector.shape_cast %101 : vector<2x128xf32> to vector<1x1x1x2x128xf32>
    tpu.vector_store %arg5[%c0_80, %c0_81, %c6_82, %c0_83, %c0_84], %104 {strides = array<i32>} : memref<1x1x10x2x128xf32, #tpu.memory_space<vmem>>, vector<1x1x1x2x128xf32>,
    %c0_85 = arith.constant 0 : index
    %c0_86 = arith.constant 0 : index
    %c7 = arith.constant 7 : index
    %c0_87 = arith.constant 0 : index
    %c0_88 = arith.constant 0 : index
    %105 = vector.load %arg5[%c0_85, %c0_86, %c7, %c0_87, %c0_88] : memref<1x1x10x2x128xf32, #tpu.memory_space<vmem>>, vector<1x1x1x2x128xf32>
    %106 = vector.shape_cast %105 : vector<1x1x1x2x128xf32> to vector<2x128xf32>
    %107 = arith.addf %106, %20 : vector<2x128xf32>
    %c0_89 = arith.constant 0 : index
    %c0_90 = arith.constant 0 : index
    %c7_91 = arith.constant 7 : index
    %c0_92 = arith.constant 0 : index
    %c0_93 = arith.constant 0 : index
    %108 = vector.load %arg5[%c0_89, %c0_90, %c7_91, %c0_92, %c0_93] : memref<1x1x10x2x128xf32, #tpu.memory_space<vmem>>, vector<1x1x1x2x128xf32>
    %109 = vector.shape_cast %108 : vector<1x1x1x2x128xf32> to vector<2x128xf32>
    %110 = vector.shape_cast %107 : vector<2x128xf32> to vector<1x1x1x2x128xf32>
    tpu.vector_store %arg5[%c0_89, %c0_90, %c7_91, %c0_92, %c0_93], %110 {strides = array<i32>} : memref<1x1x10x2x128xf32, #tpu.memory_space<vmem>>, vector<1x1x1x2x128xf32>,
    %c0_94 = arith.constant 0 : index
    %c0_95 = arith.constant 0 : index
    %c8 = arith.constant 8 : index
    %c0_96 = arith.constant 0 : index
    %c0_97 = arith.constant 0 : index
    %111 = vector.load %arg5[%c0_94, %c0_95, %c8, %c0_96, %c0_97] : memref<1x1x10x2x128xf32, #tpu.memory_space<vmem>>, vector<1x1x1x2x128xf32>
    %112 = vector.shape_cast %111 : vector<1x1x1x2x128xf32> to vector<2x128xf32>
    %113 = arith.addf %112, %24 : vector<2x128xf32>
    %c0_98 = arith.constant 0 : index
    %c0_99 = arith.constant 0 : index
    %c8_100 = arith.constant 8 : index
    %c0_101 = arith.constant 0 : index
    %c0_102 = arith.constant 0 : index
    %114 = vector.load %arg5[%c0_98, %c0_99, %c8_100, %c0_101, %c0_102] : memref<1x1x10x2x128xf32, #tpu.memory_space<vmem>>, vector<1x1x1x2x128xf32>
    %115 = vector.shape_cast %114 : vector<1x1x1x2x128xf32> to vector<2x128xf32>
    %116 = vector.shape_cast %113 : vector<2x128xf32> to vector<1x1x1x2x128xf32>
    tpu.vector_store %arg5[%c0_98, %c0_99, %c8_100, %c0_101, %c0_102], %116 {strides = array<i32>} : memref<1x1x10x2x128xf32, #tpu.memory_space<vmem>>, vector<1x1x1x2x128xf32>,
    %c0_103 = arith.constant 0 : index
    %c0_104 = arith.constant 0 : index
    %c9 = arith.constant 9 : index
    %c0_105 = arith.constant 0 : index
    %c0_106 = arith.constant 0 : index
    %117 = vector.load %arg5[%c0_103, %c0_104, %c9, %c0_105, %c0_106] : memref<1x1x10x2x128xf32, #tpu.memory_space<vmem>>, vector<1x1x1x2x128xf32>
    %118 = vector.shape_cast %117 : vector<1x1x1x2x128xf32> to vector<2x128xf32>
    %119 = arith.addf %118, %28 : vector<2x128xf32>
    %c0_107 = arith.constant 0 : index
    %c0_108 = arith.constant 0 : index
    %c9_109 = arith.constant 9 : index
    %c0_110 = arith.constant 0 : index
    %c0_111 = arith.constant 0 : index
    %120 = vector.load %arg5[%c0_107, %c0_108, %c9_109, %c0_110, %c0_111] : memref<1x1x10x2x128xf32, #tpu.memory_space<vmem>>, vector<1x1x1x2x128xf32>
    %121 = vector.shape_cast %120 : vector<1x1x1x2x128xf32> to vector<2x128xf32>
    %122 = vector.shape_cast %119 : vector<2x128xf32> to vector<1x1x1x2x128xf32>
    tpu.vector_store %arg5[%c0_107, %c0_108, %c9_109, %c0_110, %c0_111], %122 {strides = array<i32>} : memref<1x1x10x2x128xf32, #tpu.memory_space<vmem>>, vector<1x1x1x2x128xf32>,
    return
  }
  func.func @transform_0(%arg0: i32, %arg1: i32, %arg2: i32) -> (i32, i32, i32, i32) {
    %c1_i32 = arith.constant 1 : i32
    %0 = arith.muli %arg1, %c1_i32 : i32
    %1 = arith.addi %0, %arg2 : i32
    %c0_i32 = arith.constant 0 : i32
    %c0_i32_0 = arith.constant 0 : i32
    %c0_i32_1 = arith.constant 0 : i32
    return %arg0, %c0_i32, %1, %c0_i32_0 : i32, i32, i32, i32
  }
  func.func @transform_1(%arg0: i32, %arg1: i32, %arg2: i32) -> (i32, i32, i32, i32) {
    %c1_i32 = arith.constant 1 : i32
    %0 = arith.muli %arg1, %c1_i32 : i32
    %1 = arith.addi %0, %arg2 : i32
    %c0_i32 = arith.constant 0 : i32
    %c0_i32_0 = arith.constant 0 : i32
    %c0_i32_1 = arith.constant 0 : i32
    return %arg0, %c0_i32, %1, %c0_i32_0 : i32, i32, i32, i32
  }
  func.func @transform_2(%arg0: i32, %arg1: i32, %arg2: i32) -> (i32, i32, i32, i32, i32) {
    %c0_i32 = arith.constant 0 : i32
    %c0_i32_0 = arith.constant 0 : i32
    %c0_i32_1 = arith.constant 0 : i32
    %c0_i32_2 = arith.constant 0 : i32
    return %arg0, %arg1, %c0_i32, %c0_i32_0, %c0_i32_1 : i32, i32, i32, i32, i32
  }
}

</mosaic_0001>

<bundles_post_ra>
// kernel: ce_dice_loss.1
= control target key start
LH: loop header
LB: loop body
LE: loop exit
PB: predicated region body
PF: predicated region fallthrough
CT: control target
= control target key end

     0   :  { %s560_s9 = smov 0   ;;  %s562_s10 = smov 0   ;;  %s628_s0 = inlined_call_operand.vmem [shape: s32[2,1,2,128], index: 0, kind: input, shape index: {}]   ;;  %s629_s1 = inlined_call_operand.vmem [shape: f32[2,4,2,128], index: 1, kind: input, shape index: {}]   ;;  %s630_s2 = inlined_call_operand.vmem [shape: f32[2,1,10,2,128], index: 2, kind: output, shape index: {}]  }
   0x1   :  { %s564_s11 = smov 0  }
   0x2 LB: > { %s31_s12 = sadd.s32 1, %s538_s10  ;;  %p449_p0 = scmp.ge.s32.totalorder %s542_s11, 1  ;;  %s542_s11 = sphi %s564_s11, %s12_s11   ;;  %s538_s10 = sphi %s562_s10, %s632_s10   ;;  %s534_s9 = sphi %s560_s9, %s631_s9  }
   0x3   : > { %p33_p1 = scmp.ge.s32.totalorder %s31_s12, 2  ;;  %p160_p2 = scmp.lt.s32.totalorder %s542_s11, 3 }
   0x5   : > { %s634_s12 = smov (%p33_p1, %s31_s12), 0  ;;  %p161_p3 = pnand %p449_p0, %p160_p2 }
   0x6   : > { %p199_p4 = scmp.lt.s32.totalorder (!%p161_p3), %s534_s9, 1 }
   0x7   : > { %164 = sbr.rel (%p161_p3) target bundleno = 78 (0x4e), region = 28 }
   0xc   : > { %s636_s9 = smov (!%p199_p4, %s534_s9), 1  ;;  %v544_v0 = vmov 0.0  }
   0xd   : > { %s482_s13 = smul.u32 20, %s636_s9  ;;  %s450_s14 = sshll.u32 %s636_s9, 1 }
   0xe   : > { %s205_s17 = scalar_lea.vmem %s628_s0, %s450_s14  ;;  %s481_s18 = sshll.u32 %s636_s9, 3 }
   0xf   : > { %s584_s21 = scalar_lea.vmem %s630_s2, %s482_s13  ;;  %s215_s24 = scalar_lea.vmem %s629_s1, %s481_s18  ;;  %v240_v3 = vld [vmem:[%s205_s17] sm:$0x3] }
  0x10   : > { %230 = vst [vmem:[%s584_s21] sm:$0x3] %v544_v0  ;;  %231 = vst [vmem:[%s584_s21 + $0x2] sm:$0x3] %v544_v0  ;;  %v241_v1 = vld [vmem:[%s215_s24] sm:$0x3]  ;;  %vm251_vm0 = vcmp.eq.s32.totalorder %v240_v3, 1 }
  0x11   : > { %232 = vst [vmem:[%s584_s21 + $0x4] sm:$0x3] %v544_v0  ;;  %233 = vst [vmem:[%s584_s21 + $0x6] sm:$0x3] %v544_v0  ;;  %v454_v2 = vld [vmem:[%s215_s24 + $0x2] sm:$0x3] }
  0x12   : > { %234 = vst [vmem:[%s584_s21 + $0x8] sm:$0x3] %v544_v0  ;;  %235 = vst [vmem:[%s584_s21 + $0xa] sm:$0x3] %v544_v0  ;;  %v455_v4 = vld [vmem:[%s215_s24 + $0x4] sm:$0x3]  ;;  %v260_v5 = vmax.f32 %v241_v1, %v454_v2 }
  0x13   : > { %236 = vst [vmem:[%s584_s21 + $0xc] sm:$0x3] %v544_v0  ;;  %237 = vst [vmem:[%s584_s21 + $0xe] sm:$0x3] %v544_v0  ;;  %v456_v6 = vld [vmem:[%s215_s24 + $0x6] sm:$0x3] }
  0x14   : > { %238 = vst [vmem:[%s584_s21 + $0x10] sm:$0x3] %v544_v0  ;;  %239 = vst [vmem:[%s584_s21 + $0x12] sm:$0x3] %v544_v0  ;;  %vm254_vm1 = vcmp.eq.s32.totalorder %v240_v3, 2  ;;  %v261_v7 = vmax.f32 %v260_v5, %v455_v4  ;;  %vm257_vm2 = vcmp.eq.s32.totalorder %v240_v3, 3 }
  0x15   : > { %v458_v9 = vsel %vm251_vm0, 1.0, %v544_v0  ;;  %v459_v10 = vsel %vm254_vm1, 1.0, %v544_v0  ;;  %v460_v17 = vsel %vm257_vm2, 1.0, %v544_v0  ;;  %vm248_vm3 = vcmp.eq.s32.totalorder %v240_v3, 0 }
  0x16   : > { %v262_v8 = vmax.f32 %v261_v7, %v456_v6  ;;  %v457_v37 = vsel %vm248_vm3, 1.0, %v544_v0 }
  0x17   : > { %v461_v39 = vld [vmem:[%s584_s21 + $0x2] sm:$0x3] }
  0x18   : > { %v263_v11 = vsub.f32 %v241_v1, %v262_v8  ;;  %v264_v12 = vsub.f32 %v454_v2, %v262_v8  ;;  %v265_v13 = vsub.f32 %v455_v4, %v262_v8  ;;  %v266_v14 = vsub.f32 %v456_v6, %v262_v8  ;;  %v463_v46 = vld [vmem:[%s584_s21 + $0x4] sm:$0x3]  ;;  %v465_v47 = vld [vmem:[%s584_s21 + $0x6] sm:$0x3]  ;;  %v299_v1 = vld [vmem:[%s584_s21] sm:$0x3] }
  0x19   : > { %v467_v36 = vld [vmem:[%s584_s21 + $0x8] sm:$0x3]  ;;  %v469_v48 = vld [vmem:[%s584_s21 + $0xa] sm:$0x3] }
  0x1a   : > { %v473_v15 = vld [vmem:[%s584_s21 + $0xe] sm:$0x3]  ;;  %v267_v21 = vmul.f32 1.442695, %v263_v11  ;;  %v269_v22 = vmul.f32 1.442695, %v264_v12 }
  0x1b   : > { %v475_v16 = vld [vmem:[%s584_s21 + $0x10] sm:$0x3]  ;;  %v328_v18 = vadd.f32 %v473_v15, %v458_v9  ;;  %v477_v20 = vld [vmem:[%s584_s21 + $0x12] sm:$0x3]  ;;  %v271_v23 = vmul.f32 1.442695, %v265_v13 }
  0x1c   : > { %v332_v19 = vadd.f32 %v475_v16, %v459_v10  ;;  %v336_v24 = vadd.f32 %v477_v20, %v460_v17  ;;  %v273_v25 = vmul.f32 1.442695, %v266_v14  ;;  %508 = vpow2.f32 %v267_v21  ;;  %v471_v53 = vld [vmem:[%s584_s21 + $0xc] sm:$0x3] }
  0x1d   : > { %474 = vst [vmem:[%s584_s21 + $0xe] sm:$0x3] %v328_v18  ;;  %510 = vpow2.f32 %v269_v22 }
  0x1e   : > { %476 = vst [vmem:[%s584_s21 + $0x10] sm:$0x3] %v332_v19  ;;  %478 = vst [vmem:[%s584_s21 + $0x12] sm:$0x3] %v336_v24  ;;  %512 = vpow2.f32 %v271_v23 }
  0x1f   : > { %514 = vpow2.f32 %v273_v25 }
  0x29   : > { %v509_v26 = vpop.eup %508 }
  0x2a   : > { %v511_v27 = vpop.eup %510 }
  0x2b   : > { %v513_v28 = vpop.eup %512  ;;  %v275_v29 = vadd.f32 %v511_v27, %v509_v26 }
  0x2c   : > { %v515_v30 = vpop.eup %514 }
  0x2d   : > { %v276_v31 = vadd.f32 %v513_v28, %v275_v29 }
  0x2f   : > { %v277_v32 = vadd.f32 %v515_v30, %v276_v31 }
  0x31   : > { %516 = vlog2.f32 %v277_v32 }
  0x32   : > { %518 = vrcp.f32 %v277_v32 }
  0x3e   : > { %v517_v33 = vpop.eup %516 }
  0x3f   : > { %v519_v34 = vpop.eup %518  ;;  %v279_v35 = vmul.f32 0.6931472, %v517_v33 }
  0x40   : > { %v293_v38 = vmul.f32 %v519_v34, %v511_v27  ;;  %v294_v40 = vmul.f32 %v519_v34, %v513_v28  ;;  %v295_v41 = vmul.f32 %v519_v34, %v515_v30 }
  0x41   : > { %v282_v42 = vsub.f32 %v279_v35, %v263_v11  ;;  %v284_v43 = vsub.f32 %v279_v35, %v264_v12  ;;  %v287_v44 = vsub.f32 %v279_v35, %v265_v13  ;;  %v290_v45 = vsub.f32 %v279_v35, %v266_v14 }
  0x42   : > { %v296_v49 = vmul.f32 %v458_v9, %v293_v38  ;;  %v297_v50 = vmul.f32 %v459_v10, %v294_v40  ;;  %v298_v51 = vmul.f32 %v460_v17, %v295_v41  ;;  %v316_v52 = vadd.f32 %v467_v36, %v293_v38 }
  0x43   : > { %v283_v54 = vmul.f32 %v457_v37, %v282_v42  ;;  %v285_v55 = vmul.f32 %v458_v9, %v284_v43  ;;  %v288_v56 = vmul.f32 %v459_v10, %v287_v44  ;;  %v320_v60 = vadd.f32 %v469_v48, %v294_v40 }
  0x44   : > { %v304_v57 = vadd.f32 %v461_v39, %v296_v49  ;;  %v308_v58 = vadd.f32 %v463_v46, %v297_v50  ;;  %v312_v59 = vadd.f32 %v465_v47, %v298_v51  ;;  %468 = vst [vmem:[%s584_s21 + $0x8] sm:$0x3] %v316_v52  ;;  %v291_v62 = vmul.f32 %v460_v17, %v290_v45 }
  0x45   : > { %v286_v61 = vadd.f32 %v285_v55, %v283_v54  ;;  %v324_v63 = vadd.f32 %v471_v53, %v295_v41  ;;  %470 = vst [vmem:[%s584_s21 + $0xa] sm:$0x3] %v320_v60 }
  0x46   : > { %462 = vst [vmem:[%s584_s21 + $0x2] sm:$0x3] %v304_v57  ;;  %464 = vst [vmem:[%s584_s21 + $0x4] sm:$0x3] %v308_v58 }
  0x47   : > { %466 = vst [vmem:[%s584_s21 + $0x6] sm:$0x3] %v312_v59  ;;  %v289_v0 = vadd.f32 %v288_v56, %v286_v61  ;;  %472 = vst [vmem:[%s584_s21 + $0xc] sm:$0x3] %v324_v63 }
  0x49   : > { %v292_v2 = vadd.f32 %v291_v62, %v289_v0 }
  0x4b   : > { %v300_v3 = vadd.f32 %v299_v1, %v292_v2 }
  0x4d   : > { %301 = vst [vmem:[%s584_s21] sm:$0x3] %v300_v3 }
  0x4e PF: > { %s12_s11 = sadd.s32 1, %s542_s11   ;;  %s631_s9 = smov %s538_s10 }
  0x4f   : > { %p9_p5 = scmp.ge.s32.totalorder %s12_s11, 4   ;;  %s632_s10 = smov %s634_s12 }
  0x51   :  { %11 = sbr.rel (!%p9_p5) target bundleno = 2 (0x2), region = 77 }

</bundles_post_ra>
